<compile_context>
chip_gen: v7x
topology: tpu7x:2x2x1
jax: 0.10.0
libtpu: 0.0.40
codegen_flags: <defaults>
</compile_context>

<pallas_src>
import numpy as np
import jax
import jax.numpy as jnp
from jax.experimental import pallas as pl
from jax.experimental.pallas import tpu as pltpu


def _conv2x2_s2_p1_kernel(b_ref, x_ref, pw_ref, csel_ref, rsel_ref, o_ref):
    """Fused Conv2d(1,1,k=2,s=2,p=1) over the whole (small) batch in one shot.

    b_ref    : SMEM (1,)         f32  bias
    x_ref    : VMEM (N*H, W)          input (batch+rows flattened; channel squeezed)
    pw_ref   : VMEM (N*H, W)     f32  per-element tap weight (padded-coord parity)
    csel_ref : VMEM (W, Wo)      f32  0/1 stride-2 column pair-sum selector
    rsel_ref : VMEM (N*Ho, N*H)  f32  0/1 block-diag stride-2 row pair-sum selector
    o_ref    : VMEM (N*Ho, Wo)        output
    """
    bias = b_ref[0]

    # VPU: scale every input element once by its conv-tap weight (the weight mask is
    # a hoisted constant operand -> no in-kernel iota / mod / select work).
    z = x_ref[...].astype(jnp.float32) * pw_ref[...]                       # (N*H, W)

    # MXU: exactly two dots for the whole batch (stride-2 window pair-sums).
    zc = jnp.dot(z, csel_ref[...], preferred_element_type=jnp.float32)     # (N*H, Wo)
    out = jnp.dot(rsel_ref[...], zc, preferred_element_type=jnp.float32)   # (N*Ho, Wo)

    # Single merged store of one contiguous output region.
    o_ref[...] = (out + bias).astype(o_ref.dtype)


def _padded_tile_bytes(rows, cols, bytes_per_elem=4):
    # VMEM footprint of a 2-D f32 block after (8, 128) tile padding.
    return ((rows + 7) // 8 * 8) * ((cols + 127) // 128 * 128) * bytes_per_elem


def net_forward(x, weight, bias):
    """Forward pass of `Net`: Conv2d(1, 1, kernel_size=2, stride=2, padding=1).

    x:      (N, 1, H, W) float32 (NCHW)
    weight: (1, 1, 2, 2) float32 (OIHW)
    bias:   (1,) float32
    returns (N, 1, Ho, Wo) float32   (output is cast back to x.dtype at the end)
    """
    N, C, H, W = x.shape
    assert C == 1, "Net's conv has in_channels=1"
    kh = kw = 2
    stride = 2
    pad = 1
    Ho = (H + 2 * pad - kh) // stride + 1
    Wo = (W + 2 * pad - kw) // stride + 1

    # ---- hoisted trace-time constants --------------------------------------
    # Input element x[h, w] sits at padded coordinate (h+1, w+1); with k=2, s=2 the
    # windows are non-overlapping, so its unique tap weight is w[(h+1)&1, (w+1)&1].
    ki = (jnp.arange(H) + 1) & 1
    kj = (jnp.arange(W) + 1) & 1
    w2 = weight.reshape(2, 2).astype(jnp.float32)
    pw = w2[ki[:, None], kj[None, :]]                       # (H, W)
    pw_full = jnp.tile(pw, (N, 1))                          # (N*H, W) matches flat x

    # 0/1 selectors for the stride-2 pair-sums (numpy -> baked compile-time consts).
    csel = ((np.arange(W)[:, None] + 1) // 2
            == np.arange(Wo)[None, :]).astype(np.float32)   # (W, Wo)
    rsel_1 = ((np.arange(H)[None, :] + 1) // 2
              == np.arange(Ho)[:, None]).astype(np.float32)  # (Ho, H)
    rsel = np.kron(np.eye(N, dtype=np.float32), rsel_1)      # (N*Ho, N*H) block-diag

    x2 = x[:, 0, :, :].reshape(N * H, W)                    # free: merge leading dims
    b = bias.reshape(1).astype(jnp.float32)

    # Whole-problem-in-one-VMEM-block guard against the tightest budget (v7x scoped
    # VMEM default 32 MiB); x2 factor 2 accounts for double-buffering of the input.
    vmem_est = (2 * _padded_tile_bytes(N * H, W)            # x (double-buffered)
                + _padded_tile_bytes(N * H, W)               # pw
                + _padded_tile_bytes(W, Wo)                  # csel
                + _padded_tile_bytes(N * Ho, N * H)          # rsel
                + 2 * _padded_tile_bytes(N * Ho, Wo))        # output
    assert vmem_est < 24 * 1024 * 1024, (
        "single-block path exceeds conservative VMEM budget; a tiled (grid over N / "
        "H-row-blocks) fallback is required for shapes this large")

    flops = (N * H * W                       # tap-weight multiply (VPU)
             + 2 * N * H * W * Wo            # column pair-sum dot
             + 2 * (N * Ho) * (N * H) * Wo   # block-diag row pair-sum dot
             + N * Ho * Wo)                  # bias add
    bytes_accessed = 4 * (x2.size + pw_full.size + csel.size + rsel.size
                          + N * Ho * Wo + 1)

    out2 = pl.pallas_call(
        _conv2x2_s2_p1_kernel,
        out_shape=jax.ShapeDtypeStruct((N * Ho, Wo), x.dtype),
        grid=(1,),  # single step: whole (toy-sized) problem fits one VMEM block
        in_specs=[
            pl.BlockSpec(memory_space=pltpu.MemorySpace.SMEM),      # bias scalar
            pl.BlockSpec((N * H, W), lambda i: (0, 0)),             # input
            pl.BlockSpec((N * H, W), lambda i: (0, 0)),             # tap-weight mask
            pl.BlockSpec((W, Wo), lambda i: (0, 0)),                # col selector
            pl.BlockSpec((N * Ho, N * H), lambda i: (0, 0)),        # row selector
        ],
        out_specs=pl.BlockSpec((N * Ho, Wo), lambda i: (0, 0)),
        compiler_params=pltpu.CompilerParams(dimension_semantics=("arbitrary",)),
        cost_estimate=pl.CostEstimate(
            flops=flops, transcendentals=0, bytes_accessed=bytes_accessed),
    )(b, x2, pw_full, jnp.asarray(csel), jnp.asarray(rsel))

    # Back to NCHW: (N, 1, Ho, Wo); the leading-dim split happens outside the kernel.
    return out2.reshape(N, Ho, Wo)[:, None, :, :]


if __name__ == "__main__":
    # Deterministic parameters, exactly as in the PyTorch module __init__.
    weight = jnp.array([[1.0, 2.0], [3.0, 4.0]], dtype=jnp.float32).reshape(1, 1, 2, 2)
    bias = jnp.zeros((1,), dtype=jnp.float32)

    # Deterministic small input consistent with the module (NCHW, 1 input channel).
    key = jax.random.PRNGKey(0)
    x = jax.random.normal(key, (2, 1, 16, 16), dtype=jnp.float32)

    y = net_forward(x, weight, bias)
    y = jax.block_until_ready(y)

    # Reference check against XLA's conv (cross-correlation, same as nn.Conv2d).
    y_ref = jax.lax.conv_general_dilated(
        x, weight, window_strides=(2, 2), padding=((1, 1), (1, 1)),
        dimension_numbers=("NCHW", "OIHW", "NCHW"),
        precision=jax.lax.Precision.HIGHEST,
    ) + bias.reshape(1, 1, 1, 1)
    assert y.shape == (2, 1, 9, 9), y.shape
    assert jnp.allclose(y, y_ref, rtol=1e-6, atol=1e-5), "mismatch vs reference conv"

    print("KERNEL_OK")
</pallas_src>

<mosaic_0001>
module attributes {stable_mosaic.version = 11 : i64} {
  func.func @_conv2x2_s2_p1_kernel(%arg0: i32, %arg1: memref<1xf32, #tpu.memory_space<smem>>, %arg2: memref<32x16xf32, #tpu.memory_space<vmem>>, %arg3: memref<32x16xf32, #tpu.memory_space<vmem>>, %arg4: memref<16x9xf32, #tpu.memory_space<vmem>>, %arg5: memref<18x32xf32, #tpu.memory_space<vmem>>, %arg6: memref<18x9xf32, #tpu.memory_space<vmem>>) attributes {dimension_semantics = [#tpu.dimension_semantics<arbitrary>], iteration_bounds = array<i64: 1>, scalar_prefetch = 0 : i64, scratch_operands = 0 : i64, tpu.core_type = #tpu.core_type<tc>, window_params = [{transform_indices = @transform_0, window_bounds = array<i64: 1>}, {pipeline_mode = #tpu.pipeline_mode<synchronous>, transform_indices = @transform_1, window_bounds = array<i64: 32, 16>}, {pipeline_mode = #tpu.pipeline_mode<synchronous>, transform_indices = @transform_2, window_bounds = array<i64: 32, 16>}, {pipeline_mode = #tpu.pipeline_mode<synchronous>, transform_indices = @transform_3, window_bounds = array<i64: 16, 9>}, {pipeline_mode = #tpu.pipeline_mode<synchronous>, transform_indices = @transform_4, window_bounds = array<i64: 18, 32>}, {pipeline_mode = #tpu.pipeline_mode<synchronous>, transform_indices = @transform_5, window_bounds = array<i64: 18, 9>}]} {
    %c0 = arith.constant 0 : index
    %0 = memref.load %arg1[%c0] : memref<1xf32, #tpu.memory_space<smem>>
    %c0_0 = arith.constant 0 : index
    %c0_1 = arith.constant 0 : index
    %1 = vector.load %arg2[%c0_0, %c0_1] : memref<32x16xf32, #tpu.memory_space<vmem>>, vector<32x16xf32>
    %c0_2 = arith.constant 0 : index
    %c0_3 = arith.constant 0 : index
    %2 = vector.load %arg3[%c0_2, %c0_3] : memref<32x16xf32, #tpu.memory_space<vmem>>, vector<32x16xf32>
    %3 = arith.mulf %1, %2 : vector<32x16xf32>
    %c0_4 = arith.constant 0 : index
    %c0_5 = arith.constant 0 : index
    %4 = vector.load %arg4[%c0_4, %c0_5] : memref<16x9xf32, #tpu.memory_space<vmem>>, vector<16x9xf32>
    %cst = arith.constant dense<0.000000e+00> : vector<32x9xf32>
    %5 = tpu.matmul %3, %4, %cst {dimension_numbers = #tpu.dot_dimension_numbers<[1], [0], [0], [1], [0, 0, 1, 1], [], []>} : vector<32x16xf32>, vector<16x9xf32>, vector<32x9xf32> -> vector<32x9xf32>
    %c0_6 = arith.constant 0 : index
    %c0_7 = arith.constant 0 : index
    %6 = vector.load %arg5[%c0_6, %c0_7] : memref<18x32xf32, #tpu.memory_space<vmem>>, vector<18x32xf32>
    %cst_8 = arith.constant dense<0.000000e+00> : vector<18x9xf32>
    %7 = tpu.matmul %6, %5, %cst_8 {dimension_numbers = #tpu.dot_dimension_numbers<[1], [0], [0], [1], [0, 0, 1, 1], [], []>} : vector<18x32xf32>, vector<32x9xf32>, vector<18x9xf32> -> vector<18x9xf32>
    %8 = vector.broadcast %0 : f32 to vector<18x9xf32>
    %9 = arith.addf %7, %8 : vector<18x9xf32>
    %c0_9 = arith.constant 0 : index
    %c0_10 = arith.constant 0 : index
    %10 = vector.load %arg6[%c0_9, %c0_10] : memref<18x9xf32, #tpu.memory_space<vmem>>, vector<18x9xf32>
    tpu.vector_store %arg6[%c0_9, %c0_10], %9 {strides = array<i32>} : memref<18x9xf32, #tpu.memory_space<vmem>>, vector<18x9xf32>,
    return
  }
  func.func @transform_0(%arg0: i32) -> i32 {
    %c0_i32 = arith.constant 0 : i32
    %c0_i32_0 = arith.constant 0 : i32
    return %c0_i32 : i32
  }
  func.func @transform_1(%arg0: i32) -> (i32, i32) {
    %c0_i32 = arith.constant 0 : i32
    %c0_i32_0 = arith.constant 0 : i32
    %c0_i32_1 = arith.constant 0 : i32
    return %c0_i32, %c0_i32_0 : i32, i32
  }
  func.func @transform_2(%arg0: i32) -> (i32, i32) {
    %c0_i32 = arith.constant 0 : i32
    %c0_i32_0 = arith.constant 0 : i32
    %c0_i32_1 = arith.constant 0 : i32
    return %c0_i32, %c0_i32_0 : i32, i32
  }
  func.func @transform_3(%arg0: i32) -> (i32, i32) {
    %c0_i32 = arith.constant 0 : i32
    %c0_i32_0 = arith.constant 0 : i32
    %c0_i32_1 = arith.constant 0 : i32
    return %c0_i32, %c0_i32_0 : i32, i32
  }
  func.func @transform_4(%arg0: i32) -> (i32, i32) {
    %c0_i32 = arith.constant 0 : i32
    %c0_i32_0 = arith.constant 0 : i32
    %c0_i32_1 = arith.constant 0 : i32
    return %c0_i32, %c0_i32_0 : i32, i32
  }
  func.func @transform_5(%arg0: i32) -> (i32, i32) {
    %c0_i32 = arith.constant 0 : i32
    %c0_i32_0 = arith.constant 0 : i32
    %c0_i32_1 = arith.constant 0 : i32
    return %c0_i32, %c0_i32_0 : i32, i32
  }
}

</mosaic_0001>

<bundles_post_ra>
// kernel: tpu_custom_call.1
= control target key start
LH: loop header
LB: loop body
LE: loop exit
PB: predicated region body
PF: predicated region fallthrough
CT: control target
= control target key end

     0   :  { %vm36_vm0 = vcmask 130048   ;;  %v301_v15 = vmov 0.0|0.0   ;;  %vm302_vm1 = vmmov 0   ;;  %v303_v16 = vmov 0.0   ;;  %s392_s3 = inlined_call_operand.vmem [shape: f32[16,9], index: 3, kind: input, shape index: {}]   ;;  %s393_s1 = inlined_call_operand.vmem [shape: f32[32,16], index: 1, kind: input, shape index: {}]   ;;  %s394_s2 = inlined_call_operand.vmem [shape: f32[32,16], index: 2, kind: input, shape index: {}]   ;;  %s395_s4 = inlined_call_operand.vmem [shape: f32[18,32], index: 4, kind: input, shape index: {}]   ;;  %s396_s0 = inlined_call_operand.<no memory space> [shape: f32[1], index: 0, kind: input, shape index: {}]   ;;  %s397_s5 = inlined_call_operand.vmem [shape: f32[18,9], index: 5, kind: output, shape index: {}]  }
   0x1   :  { %v34_v0 = vld [vmem:[%s392_s3] sm:$0xff]  ;;  %v35_v1 = vld [vmem:[%s392_s3 + $0x8] sm:$0xff]  ;;  %v24_v8 = vld [vmem:[%s393_s1 + $0x10] sm:$0xff]  ;;  %294 = vmatprep.subr.bf16.mxu1 %v301_v15  ;;  %278 = vmatprep.mubr.msk.f32.mxu1 %vm302_vm1, %v303_v16  ;;  %vm138_vm2 = vcmask 261120   ;;  %v137_v26 = vstv %s396_s0  ;;  %vm228_vm3 = vcmask 72704   ;;  %vm231_vm4 = vcmask 66560  }
   0x2   :  { %v22_v2 = vld [vmem:[%s393_s1] sm:$0xff]  ;;  %v284_v3 = vpack.c.bf16 %v35_v1, %v34_v0  ;;  %v23_v5 = vld [vmem:[%s393_s1 + $0x8] sm:$0xff]  ;;  %v28_v9 = vld [vmem:[%s394_s2 + $0x10] sm:$0xff] }
   0x3   :  { %v26_v4 = vld [vmem:[%s394_s2] sm:$0xff]  ;;  %v27_v6 = vld [vmem:[%s394_s2 + $0x8] sm:$0xff]  ;;  %v32_v11 = vmul.f32 %v28_v9, %v24_v8  ;;  %v25_v12 = vld [vmem:[%s393_s1 + $0x18] sm:$0xff] }
   0x4   :  { %v30_v7 = vmul.f32 %v26_v4, %v22_v2  ;;  %285 = vmatprep.subr.bf16.mxu0 %v284_v3  ;;  %v31_v10 = vmul.f32 %v27_v6, %v23_v5  ;;  %v29_v13 = vld [vmem:[%s394_s2 + $0x18] sm:$0xff]  ;;  %v134_v23 = vld [vmem:[%s395_s4] sm:$0xff]  ;;  %v135_v24 = vld [vmem:[%s395_s4 + $0x8] sm:$0xff] }
   0x5   :  { %287 = vmatpush3.bf16.msra.mxu0 %v284_v3  ;;  %v33_v14 = vmul.f32 %v29_v13, %v25_v12  ;;  %v136_v25 = vld [vmem:[%s395_s4 + $0x10] sm:$0x3] }
   0x6   :  { %261 = vmatprep.mubr.msk.f32.mxu0 %vm36_vm0, %v30_v7  ;;  %288 = vmatprep.subr.bf16.mxu0 %v301_v15 }
   0x8   :  { %262 = vmatmul.mubr.msk.f32.vlgmr.msra.gmra.mrb[0].mxu0 %vm36_vm0, %v31_v10 }
   0x9   :  { %264 = vmatprep.mubr.msk.f32.mxu0 %vm36_vm0, %v32_v11 }
   0xc   :  { %265 = vmatmul.mubr.msk.f32.gmra.mrb[2].mxu0 %vm36_vm0, %v33_v14 }
   0xd   :  { %275 = vmatprep.mubr.msk.f32.mxu0 %vm302_vm1, %v303_v16 }
  0xdb   :  { %v263_v17 = vpop.f32.mrb[0].mxu0 }
  0xdc   :  { %v115_v18 = vpop.f32.mrb[1].mxu0 }
  0xdd   :  { %v289_v19 = vpack.c.bf16 %v263_v17, %v115_v18 }
  0xdf   :  { %v266_v20 = vpop.f32.mrb[2].mxu0  ;;  %290 = vmatpush3.bf16.msra.mxu0 %v289_v19  ;;  %296 = vmatpush3.bf16.msra.mxu1 %v289_v19 }
  0xe0   :  { %v125_v21 = vpop.f32.mrb[3].mxu0  ;;  %291 = vmatprep.subr.bf16.mxu0 %v301_v15  ;;  %295 = vmatprep.subr.bf16.mxu1 %v301_v15 }
  0xe1   :  { %v292_v22 = vpack.c.bf16 %v266_v20, %v125_v21 }
  0xe3   :  { %293 = vmatpush3.bf16.msra.mxu0 %v292_v22  ;;  %297 = vmatpush3.bf16.msra.mxu1 %v292_v22 }
  0xe6   :  { %279 = vmatmul.mubr.msk.f32.vlgmr.msra.gmra.mrb[0].mxu1 %vm138_vm2, %v135_v24  ;;  %276 = vmatmul.mubr.msk.f32.vlgmr.msra.gmra.mrb[4].mxu0 %vm138_vm2, %v134_v23 }
  0xe7   :  { %281 = vmatprep.mubr.msk.f32.mxu1 %vm302_vm1, %v303_v16 }
  0xea   :  { %282 = vmatmul.mubr.msk.f32.gmra.mrb[2].mxu1 %vm138_vm2, %v136_v25 }
 0x1b9   :  { %v219_v27 = vpop.f32.mrb[0].mxu1  ;;  %v214_v28 = vpop.f32.mrb[4].mxu0 }
 0x1ba   :  { %v220_v29 = vadd.f32 %v219_v27, %v137_v26  ;;  %v280_v30 = vpop.f32.mrb[1].mxu1  ;;  %v215_v31 = vadd.f32 %v214_v28, %v137_v26  ;;  %v277_v32 = vpop.f32.mrb[5].mxu0 }
 0x1bc   :  { %230 = vst.msk [vmem:[%s397_s5 + $0x8] sm:$0xff] %vm228_vm3, %v220_v29  ;;  %229 = vst.msk [vmem:[%s397_s5] sm:$0xff] %vm228_vm3, %v215_v31 }
 0x1bd   :  { %v224_v33 = vpop.f32.mrb[2].mxu1 }
 0x1be   :  { %v225_v34 = vadd.f32 %v224_v33, %v137_v26  ;;  %v283_v35 = vpop.f32.mrb[3].mxu1 }
 0x1c0   :  { %232 = vst.msk [vmem:[%s397_s5 + $0x10] sm:$0x3] %vm231_vm4, %v225_v34 }

</bundles_post_ra>
